<compile_context>
chip_gen: v7x
topology: tpu7x:2x2x1
jax: 0.10.0
libtpu: 0.0.40
codegen_flags: <defaults>
</compile_context>

<pallas_src>
import functools

import jax
import jax.numpy as jnp
from jax.experimental import pallas as pl
from jax.experimental.pallas import tpu as pltpu


def _round_up(x: int, m: int) -> int:
    return (x + m - 1) // m * m


def _pick_tile(dim: int, target: int, align: int) -> int:
    """Largest tile (multiple of `align`, <= min(target, dim)) minimizing pad waste."""
    cap = min(target, dim)
    best, best_waste = align, None
    t = align
    while t <= cap:
        waste = _round_up(dim, t) - dim
        if best_waste is None or waste < best_waste or (waste == best_waste and t > best):
            best, best_waste = t, waste
        t += align
    return best


def _device_kind() -> str:
    try:
        return jax.devices()[0].device_kind.lower()
    except Exception:
        return ""


def _tile_targets_for_device() -> tuple[int, int, int]:
    """(tm, tn, tk) targets sized per TPU generation from arithmetic-intensity needs."""
    kind = _device_kind()
    if "v6" in kind:          # v6e: ~680 FLOP/byte needed, 128 MiB VMEM
        return 1024, 2048, 512
    if "v5" in kind:          # v5e/v5p: ~240 FLOP/byte suffices, 4x128 MXU
        return 512, 512, 512
    # v7x (and safe default): ~310 FLOP/byte needed, 64 MiB VMEM per TC; keep
    # tiles moderate so both TensorCores get tiles and VMEM keeps headroom.
    return 512, 1024, 512


# ------------------------------- kernels ------------------------------------


def _linear_kernel_inplace(x_ref, w_ref, b_ref, o_ref):
    """f32 output: accumulate straight into the resident output tile."""
    k = pl.program_id(2)

    @pl.when(k == 0)
    def _init():
        # Bias seeds the accumulator -> added exactly once.
        o_ref[...] = jnp.broadcast_to(b_ref[...], o_ref.shape).astype(o_ref.dtype)

    o_ref[...] += jnp.dot(x_ref[...], w_ref[...], preferred_element_type=jnp.float32)


def _linear_kernel_acc(x_ref, w_ref, b_ref, o_ref, acc_ref):
    """Non-f32 output: f32 VMEM accumulator, single cast at the last K step."""
    k = pl.program_id(2)

    @pl.when(k == 0)
    def _init():
        acc_ref[...] = jnp.broadcast_to(b_ref[...], acc_ref.shape)

    acc_ref[...] += jnp.dot(x_ref[...], w_ref[...], preferred_element_type=jnp.float32)

    @pl.when(k == pl.num_programs(2) - 1)
    def _finalize():
        o_ref[...] = acc_ref[...].astype(o_ref.dtype)


# ------------------------------- wrapper -------------------------------------


@functools.partial(jax.jit, static_argnames=("compute_dtype", "tm", "tn", "tk"))
def _linear_forward_impl(x, weight, bias, *, compute_dtype, tm, tn, tk):
    B, IN = x.shape
    IN_w, OUT = weight.shape
    assert IN == IN_w, (IN, IN_w)
    out_dtype = x.dtype

    cdt = jnp.dtype(compute_dtype)
    m_align = 16 if cdt.itemsize == 2 else 8   # bf16 packs two rows per sublane

    # Minimal-alignment padding, then tiles chosen to minimize residual slack.
    M_pad = _round_up(B, m_align)
    K_pad = _round_up(IN, 128)
    N_pad = _round_up(OUT, 128)
    tm_eff = _pick_tile(M_pad, tm, m_align)
    tk_eff = _pick_tile(K_pad, tk, 128)
    tn_eff = _pick_tile(N_pad, tn, 128)
    M_pad = _round_up(M_pad, tm_eff)
    K_pad = _round_up(K_pad, tk_eff)
    N_pad = _round_up(N_pad, tn_eff)

    # Fast path: skip the wrapper-side materialization when the operand is
    # already aligned and in the compute dtype (e.g. pre-cast weights).
    if x.shape == (M_pad, K_pad) and x.dtype == cdt:
        x_p = x
    else:
        x_p = jnp.zeros((M_pad, K_pad), cdt).at[:B, :IN].set(x.astype(cdt))
    if weight.shape == (K_pad, N_pad) and weight.dtype == cdt:
        w_p = weight
    else:
        w_p = jnp.zeros((K_pad, N_pad), cdt).at[:IN, :OUT].set(weight.astype(cdt))
    if OUT == N_pad:
        b_p = bias.astype(jnp.float32).reshape(1, N_pad)
    else:
        b_p = jnp.zeros((1, N_pad), jnp.float32).at[0, :OUT].set(bias.astype(jnp.float32))

    grid = (M_pad // tm_eff, N_pad // tn_eff, K_pad // tk_eff)
    gm, gn, _ = grid

    out_itemsize = jnp.dtype(out_dtype).itemsize
    inplace_f32 = jnp.dtype(out_dtype) == jnp.dtype(jnp.float32)

    # VMEM limit derived from the actual double-buffered footprint (+ headroom),
    # capped per chip (v7x only has 64 MiB per TensorCore).
    per_step = ((tm_eff * tk_eff + tk_eff * tn_eff) * cdt.itemsize
                + tn_eff * 4
                + tm_eff * tn_eff * out_itemsize)
    footprint = 2 * per_step + (0 if inplace_f32 else tm_eff * tn_eff * 4)
    vmem_cap = (52 << 20) if "v7" in _device_kind() else (100 << 20)
    vmem_limit = min(max(int(footprint * 3 // 2) + (8 << 20), 16 << 20), vmem_cap)

    cost = pl.CostEstimate(
        flops=2 * M_pad * N_pad * K_pad,
        transcendentals=0,
        bytes_accessed=(
            x_p.size * x_p.dtype.itemsize * gn      # x re-read once per N tile
            + w_p.size * w_p.dtype.itemsize * gm    # weight re-read once per M tile
            + b_p.size * 4 * gm
            + M_pad * N_pad * out_itemsize
        ),
    )

    in_specs = [
        pl.BlockSpec((tm_eff, tk_eff), lambda i, j, k: (i, k)),   # x follows (M, K)
        pl.BlockSpec((tk_eff, tn_eff), lambda i, j, k: (k, j)),   # w follows (K, N)
        pl.BlockSpec((1, tn_eff), lambda i, j, k: (0, j)),        # bias follows N only
    ]
    out_spec = pl.BlockSpec((tm_eff, tn_eff), lambda i, j, k: (i, j))
    cparams = pltpu.CompilerParams(
        dimension_semantics=("parallel", "parallel", "arbitrary"),
        vmem_limit_bytes=vmem_limit,
    )

    if inplace_f32:
        y_pad = pl.pallas_call(
            _linear_kernel_inplace,
            out_shape=jax.ShapeDtypeStruct((M_pad, N_pad), out_dtype),
            grid=grid,
            in_specs=in_specs,
            out_specs=out_spec,
            compiler_params=cparams,
            cost_estimate=cost,
        )(x_p, w_p, b_p)
    else:
        y_pad = pl.pallas_call(
            _linear_kernel_acc,
            out_shape=jax.ShapeDtypeStruct((M_pad, N_pad), out_dtype),
            grid=grid,
            in_specs=in_specs,
            out_specs=out_spec,
            scratch_shapes=[pltpu.VMEM((tm_eff, tn_eff), jnp.float32)],
            compiler_params=cparams,
            cost_estimate=cost,
        )(x_p, w_p, b_p)

    if (M_pad, N_pad) == (B, OUT):
        return y_pad
    return y_pad[:B, :OUT]


def linear_forward(x, weight, bias, *, compute_dtype=jnp.bfloat16,
                   tm=None, tn=None, tk=None):
    """y = x @ weight + bias via a tiled (M, N, K) Pallas matmul kernel."""
    tm_d, tn_d, tk_d = _tile_targets_for_device()
    return _linear_forward_impl(
        x, weight, bias,
        compute_dtype=jnp.dtype(compute_dtype),
        tm=tm if tm is not None else tm_d,
        tn=tn if tn is not None else tn_d,
        tk=tk if tk is not None else tk_d,
    )


if __name__ == "__main__":
    key = jax.random.PRNGKey(0)

    # ---- Small toy case matching the PyTorch module init convention ----
    in_size, out_size, batch = 32, 16, 8
    kx, kw, kb, k2 = jax.random.split(key, 4)
    x = jax.random.normal(kx, (batch, in_size), dtype=jnp.float32)
    weight = 2.0 * (jax.random.uniform(kw, (in_size, out_size), dtype=jnp.float32) - 0.5)
    bias = 2.0 * (jax.random.uniform(kb, (out_size,), dtype=jnp.float32) - 0.5)

    # f32 compute path: exact vs. plain-JAX reference.
    y_f32 = jax.block_until_ready(
        linear_forward(x, weight, bias, compute_dtype=jnp.float32)
    )
    y_ref = x @ weight + bias
    assert y_f32.shape == (batch, out_size)
    assert jnp.allclose(y_f32, y_ref, atol=1e-5, rtol=1e-5)

    # bf16 compute path (default): compare against a matching bf16-input ref.
    y_bf16 = jax.block_until_ready(linear_forward(x, weight, bias))
    x_bf = x.astype(jnp.bfloat16).astype(jnp.float32)
    w_bf = weight.astype(jnp.bfloat16).astype(jnp.float32)
    assert jnp.allclose(y_bf16, x_bf @ w_bf + bias, atol=1e-3, rtol=1e-3)

    # ---- Misaligned multi-tile case (exercises minimal-slack tile picking) ----
    B2, IN2, OUT2 = 128, 640, 384
    kx2, kw2, kb2, k3 = jax.random.split(k2, 4)
    x2 = jax.random.normal(kx2, (B2, IN2), dtype=jnp.float32)
    w2 = 2.0 * (jax.random.uniform(kw2, (IN2, OUT2), dtype=jnp.float32) - 0.5)
    b2 = 2.0 * (jax.random.uniform(kb2, (OUT2,), dtype=jnp.float32) - 0.5)
    y2 = jax.block_until_ready(linear_forward(x2, w2, b2))
    x2_bf = x2.astype(jnp.bfloat16).astype(jnp.float32)
    w2_bf = w2.astype(jnp.bfloat16).astype(jnp.float32)
    assert y2.shape == (B2, OUT2)
    assert jnp.allclose(y2, x2_bf @ w2_bf + b2, atol=2e-3, rtol=2e-3)

    # ---- bf16 inputs (exercises the f32-scratch kernel and the no-copy fast path) ----
    kx3, kw3, kb3 = jax.random.split(k3, 3)
    x3 = jax.random.normal(kx3, (32, 256), dtype=jnp.bfloat16)
    w3 = (2.0 * (jax.random.uniform(kw3, (256, 384), dtype=jnp.float32) - 0.5)).astype(jnp.bfloat16)
    b3 = (2.0 * (jax.random.uniform(kb3, (384,), dtype=jnp.float32) - 0.5)).astype(jnp.bfloat16)
    y3 = jax.block_until_ready(linear_forward(x3, w3, b3))
    ref3 = (x3.astype(jnp.float32) @ w3.astype(jnp.float32) + b3.astype(jnp.float32))
    assert y3.shape == (32, 384) and y3.dtype == jnp.bfloat16
    assert jnp.allclose(y3.astype(jnp.float32), ref3, atol=5e-2, rtol=2e-2)

    print("KERNEL_OK")
</pallas_src>

<mosaic_0001>
module attributes {stable_mosaic.version = 11 : i64} {
  func.func @_linear_kernel_inplace(%arg0: i32, %arg1: i32, %arg2: i32, %arg3: memref<8x128xf32, #tpu.memory_space<vmem>>, %arg4: memref<128x128xf32, #tpu.memory_space<vmem>>, %arg5: memref<1x128xf32, #tpu.memory_space<vmem>>, %arg6: memref<8x128xf32, #tpu.memory_space<vmem>>) attributes {dimension_semantics = [#tpu.dimension_semantics<parallel>, #tpu.dimension_semantics<parallel>, #tpu.dimension_semantics<arbitrary>], iteration_bounds = array<i64: 1, 1, 1>, scalar_prefetch = 0 : i64, scratch_operands = 0 : i64, tpu.core_type = #tpu.core_type<tc>, window_params = [{transform_indices = @transform_0, window_bounds = array<i64: 8, 128>}, {transform_indices = @transform_1, window_bounds = array<i64: 128, 128>}, {transform_indices = @transform_2, window_bounds = array<i64: 1, 128>}, {transform_indices = @transform_3, window_bounds = array<i64: 8, 128>}]} {
    %c0_i32 = arith.constant 0 : i32
    %0 = arith.cmpi eq, %arg2, %c0_i32 : i32
    %1 = arith.extui %0 : i1 to i32
    %c0_i32_0 = arith.constant 0 : i32
    %2 = arith.cmpi ne, %1, %c0_i32_0 : i32
    scf.if %2 {
      %c0_8 = arith.constant 0 : index
      %c0_9 = arith.constant 0 : index
      %9 = vector.load %arg5[%c0_8, %c0_9] : memref<1x128xf32, #tpu.memory_space<vmem>>, vector<1x128xf32>
      %10 = vector.shape_cast %9 : vector<1x128xf32> to vector<1x128xf32>
      %11 = vector.broadcast %10 : vector<1x128xf32> to vector<8x128xf32>
      %c0_10 = arith.constant 0 : index
      %c0_11 = arith.constant 0 : index
      %12 = vector.load %arg6[%c0_10, %c0_11] : memref<8x128xf32, #tpu.memory_space<vmem>>, vector<8x128xf32>
      tpu.vector_store %arg6[%c0_10, %c0_11], %11 {strides = array<i32>} : memref<8x128xf32, #tpu.memory_space<vmem>>, vector<8x128xf32>,
    } else {
    }
    %c0 = arith.constant 0 : index
    %c0_1 = arith.constant 0 : index
    %3 = vector.load %arg6[%c0, %c0_1] : memref<8x128xf32, #tpu.memory_space<vmem>>, vector<8x128xf32>
    %c0_2 = arith.constant 0 : index
    %c0_3 = arith.constant 0 : index
    %4 = vector.load %arg3[%c0_2, %c0_3] : memref<8x128xf32, #tpu.memory_space<vmem>>, vector<8x128xf32>
    %c0_4 = arith.constant 0 : index
    %c0_5 = arith.constant 0 : index
    %5 = vector.load %arg4[%c0_4, %c0_5] : memref<128x128xf32, #tpu.memory_space<vmem>>, vector<128x128xf32>
    %cst = arith.constant dense<0.000000e+00> : vector<8x128xf32>
    %6 = tpu.matmul %4, %5, %cst {dimension_numbers = #tpu.dot_dimension_numbers<[1], [0], [0], [1], [0, 0, 1, 1], [], []>} : vector<8x128xf32>, vector<128x128xf32>, vector<8x128xf32> -> vector<8x128xf32>
    %7 = arith.addf %3, %6 : vector<8x128xf32>
    %c0_6 = arith.constant 0 : index
    %c0_7 = arith.constant 0 : index
    %8 = vector.load %arg6[%c0_6, %c0_7] : memref<8x128xf32, #tpu.memory_space<vmem>>, vector<8x128xf32>
    tpu.vector_store %arg6[%c0_6, %c0_7], %7 {strides = array<i32>} : memref<8x128xf32, #tpu.memory_space<vmem>>, vector<8x128xf32>,
    return
  }
  func.func @transform_0(%arg0: i32, %arg1: i32, %arg2: i32) -> (i32, i32) {
    %c0_i32 = arith.constant 0 : i32
    return %arg0, %arg2 : i32, i32
  }
  func.func @transform_1(%arg0: i32, %arg1: i32, %arg2: i32) -> (i32, i32) {
    %c0_i32 = arith.constant 0 : i32
    return %arg2, %arg1 : i32, i32
  }
  func.func @transform_2(%arg0: i32, %arg1: i32, %arg2: i32) -> (i32, i32) {
    %c0_i32 = arith.constant 0 : i32
    %c0_i32_0 = arith.constant 0 : i32
    return %c0_i32, %arg1 : i32, i32
  }
  func.func @transform_3(%arg0: i32, %arg1: i32, %arg2: i32) -> (i32, i32) {
    %c0_i32 = arith.constant 0 : i32
    return %arg0, %arg1 : i32, i32
  }
}

</mosaic_0001>

<bundles_post_ra>
// kernel: _linear_forward_impl.1
= control target key start
LH: loop header
LB: loop body
LE: loop exit
PB: predicated region body
PF: predicated region fallthrough
CT: control target
= control target key end

     0   :  { %v236_v3 = vmov 0.0|0.0   ;;  %vm237_vm0 = vmmov 0   ;;  %v238_v6 = vmov 0.0   ;;  %s326_s0 = inlined_call_operand.vmem [shape: f32[8,128], index: 0, kind: input, shape index: {}]   ;;  %s327_s1 = inlined_call_operand.vmem [shape: f32[128,128], index: 1, kind: input, shape index: {}]   ;;  %s328_s2 = inlined_call_operand.vmem [shape: f32[1,128], index: 2, kind: input, shape index: {}]   ;;  %s329_s3 = inlined_call_operand.hbm [shape: f32[8,128], index: 3, kind: output, shape index: {}]  }
   0x1   :  { %v29_v0 = vld [vmem:[%s327_s1] sm:$0xff]  ;;  %v30_v1 = vld [vmem:[%s327_s1 + $0x8] sm:$0xff]  ;;  %v31_v2 = vld [vmem:[%s327_s1 + $0x10] sm:$0xff]  ;;  %184 = vmatprep.subr.bf16.mxu0 %v236_v3  ;;  %181 = vmatprep.mubr.msk.f32.mxu0 %vm237_vm0, %v238_v6 }
   0x2   :  { %v185_v4 = vpack.c.bf16 %v30_v1, %v29_v0  ;;  %v32_v5 = vld [vmem:[%s327_s1 + $0x18] sm:$0xff]  ;;  %v33_v8 = vld [vmem:[%s327_s1 + $0x20] sm:$0xff]  ;;  %v34_v9 = vld [vmem:[%s327_s1 + $0x28] sm:$0xff] }
   0x3   :  { %v188_v7 = vpack.c.bf16 %v32_v5, %v31_v2 }
   0x4   :  { %186 = vmatpush3.bf16.msra.mxu0 %v185_v4 }
   0x5   :  { %187 = vmatprep.subr.bf16.mxu0 %v236_v3 }
   0x6   :  { %8 = vsyncpa [#allocation3], 0  ;;  %v191_v10 = vpack.c.bf16 %v34_v9, %v33_v8  ;;  %v35_v11 = vld [vmem:[%s327_s1 + $0x30] sm:$0xff]  ;;  %v36_v12 = vld [vmem:[%s327_s1 + $0x38] sm:$0xff]  ;;  %s239_s21 = smov [#allocation2]  }
   0x7   :  { %v194_v13 = vpack.c.bf16 %v36_v12, %v35_v11  ;;  %v37_v14 = vld [vmem:[%s327_s1 + $0x40] sm:$0xff]  ;;  %v38_v15 = vld [vmem:[%s327_s1 + $0x48] sm:$0xff]  ;;  %v39_v17 = vld [vmem:[%s327_s1 + $0x50] sm:$0xff]  ;;  %s123_s22 = sshll.u32 %s239_s21, 4  ;;  %s124_s22 = int_to_ptr.vmem [resolvable:$true] %s123_s22 }
   0x8   :  { %189 = vmatpush3.bf16.msra.mxu0 %v188_v7  ;;  %v197_v16 = vpack.c.bf16 %v38_v15, %v37_v14  ;;  %v40_v18 = vld [vmem:[%s327_s1 + $0x58] sm:$0xff]  ;;  %v41_v20 = vld [vmem:[%s327_s1 + $0x60] sm:$0xff]  ;;  %v42_v21 = vld [vmem:[%s327_s1 + $0x68] sm:$0xff]  ;;  %p217_p1 = scmp.lt.s32.totalorder %s124_s22, %s124_s22 }
   0x9   :  { %190 = vmatprep.subr.bf16.mxu0 %v236_v3  ;;  %v200_v19 = vpack.c.bf16 %v40_v18, %v39_v17  ;;  %v203_v22 = vpack.c.bf16 %v42_v21, %v41_v20  ;;  %v43_v23 = vld [vmem:[%s327_s1 + $0x70] sm:$0xff]  ;;  %v44_v24 = vld [vmem:[%s327_s1 + $0x78] sm:$0xff]  ;;  %v28_v26 = vld [vmem:[%s326_s0] sm:$0xff]  ;;  %s212_s1 = scalar_lea.vmem %s124_s22, 128 }
   0xa   :  { %v206_v25 = vpack.c.bf16 %v44_v24, %v43_v23  ;;  %v131_v27 = vld [vmem:[%s328_s2] ss:$0 sm:$0xff]  ;;  %p213_p0 = scmp.ne.s32.totalorder %s124_s22, %s212_s1  ;;  %p218_p2 = scmp.lt.s32.totalorder %s212_s1, %s212_s1 }
   0xc   :  { %192 = vmatpush3.bf16.msra.mxu0 %v191_v10  ;;  %p219_p3 = por %p218_p2, %p217_p1 }
   0xd   :  { %193 = vmatprep.subr.bf16.mxu0 %v236_v3 }
   0xe   :  { %p220_p4 = pnand %p219_p3, %p213_p0 }
  0x10   :  { %195 = vmatpush3.bf16.msra.mxu0 %v194_v13 }
  0x11   :  { %196 = vmatprep.subr.bf16.mxu0 %v236_v3 }
  0x14   :  { %198 = vmatpush3.bf16.msra.mxu0 %v197_v16 }
  0x15   :  { %199 = vmatprep.subr.bf16.mxu0 %v236_v3 }
  0x18   :  { %201 = vmatpush3.bf16.msra.mxu0 %v200_v19 }
  0x19   :  { %202 = vmatprep.subr.bf16.mxu0 %v236_v3 }
  0x1c   :  { %204 = vmatpush3.bf16.msra.mxu0 %v203_v22 }
  0x1d   :  { %205 = vmatprep.subr.bf16.mxu0 %v236_v3 }
  0x20   :  { %207 = vmatpush3.bf16.msra.mxu0 %v206_v25 }
  0x23   :  { %182 = vmatmul.mubr.f32.vlgmr.msra.gmra.mrb[0].mxu0 %v28_v26 }
  0xf6   :  { %v111_v28 = vpop.f32.mrb[0].mxu0 }
  0xf7   :  { %v115_v29 = vadd.f32 %v131_v27, %v111_v28  ;;  %v183_v30 = vpop.f32.mrb[1].mxu0 }
  0xf9   :  { %116 = vst [vmem:[#allocation2] sm:$0xff] %v115_v29 }
  0xfa   :  { %223 = shalt.err (!%p220_p4)
}
  0xfb   :  { %s224_s24 = scalar_lea.hbm %s329_s3, 128 }
  0xfc   :  { %p225_p5 = scmp.ne.s32.totalorder %s329_s3, %s224_s24  ;;  %p228_p6 = scmp.lt.u32.totalorder %s224_s24, %s329_s3 }
  0xfe   :  { %p230_p7 = pnand %p228_p6, %p225_p5 }
 0x100   :  { %233 = shalt.err (!%p230_p7)
}
 0x101   :  { %126 = dma.vmem_to_hbm [thread:$0]  %s124_s22, 128, %s329_s3, [#allocation3]  }
 0x102   :  { %234 = dma.done.wait [#allocation3], 128  }
 0x103   :  { %235 = vsyncadd [#allocation3], 4294967168 }
 0x104   :  { %130 = vsyncpa [#allocation3], 1 }

</bundles_post_ra>
